<compile_context>
chip_gen: v7x
topology: tpu7x:2x2x1
jax: 0.10.0
libtpu: 0.0.40
codegen_flags: <defaults>
</compile_context>

<pallas_src>
import math

import jax
import jax.numpy as jnp
from jax.experimental import pallas as pl
from jax.experimental.pallas import tpu as pltpu

_LANES = 128
_BLOCK_ROWS = 1024          # (1024, 128) f32 tile = 512 KiB
_MIN_SUBLANE = 8


def _round_up(x, m):
    return ((x + m - 1) // m) * m


def _mix_kernel(ab_ref, start_ref, stop_ref, out_ref):
    # ab_ref lives in SMEM: ab_ref[0] = a (start coefficient),
    #                       ab_ref[1] = b (stop coefficient).
    a = ab_ref[0]
    b = ab_ref[1]
    mixed = (start_ref[...].astype(jnp.float32) * a
             + stop_ref[...].astype(jnp.float32) * b)
    out_ref[...] = mixed.astype(out_ref.dtype)


def mix_line_fourier_forward(t, cos_coef, sin_coef, frequency, starts, stops):
    """Pallas implementation of MIXLineFourier.forward(t). Returns list of params."""
    t = jnp.asarray(t, jnp.float32)

    # --- Fourier-modulated interpolation scalars (hoisted out of the kernel). ---
    cos_coef = jnp.asarray(cos_coef, jnp.float32)
    sin_coef = jnp.asarray(sin_coef, jnp.float32)
    frequency = jnp.asarray(frequency, jnp.float32)
    a = jnp.sum(cos_coef * jnp.cos(frequency * t)) + (1.0 - t)
    b = jnp.sum(sin_coef * jnp.sin(frequency * t)) + t
    ab = jnp.stack([a, b]).astype(jnp.float32)          # shape (2,), SMEM scalar pair

    # --- Fuse every (start, stop) pair into one lane-dense slab. ---
    out_shapes = [p.shape for p in stops]                # forward reshapes to stop's shape
    sizes = [int(p.size) for p in starts]
    total = sum(sizes)
    slab_dtype = jnp.result_type(*[p.dtype for p in starts], *[p.dtype for p in stops])

    rows_unpadded = pl.cdiv(total, _LANES)
    if rows_unpadded <= _BLOCK_ROWS:
        block_rows = max(_MIN_SUBLANE, _round_up(rows_unpadded, _MIN_SUBLANE))
    else:
        block_rows = _BLOCK_ROWS
    padded_rows = _round_up(rows_unpadded, block_rows)
    pad_elems = padded_rows * _LANES - total

    start_pieces = [p.reshape(-1).astype(slab_dtype) for p in starts]
    stop_pieces = [p.reshape(-1).astype(slab_dtype) for p in stops]
    if pad_elems:
        zpad = jnp.zeros((pad_elems,), slab_dtype)
        start_pieces.append(zpad)
        stop_pieces.append(zpad)
    s2 = jnp.concatenate(start_pieces).reshape(padded_rows, _LANES)
    e2 = jnp.concatenate(stop_pieces).reshape(padded_rows, _LANES)

    grid = (padded_rows // block_rows,)
    tile_spec = pl.BlockSpec((block_rows, _LANES), lambda i: (i, 0))

    out = pl.pallas_call(
        _mix_kernel,
        out_shape=jax.ShapeDtypeStruct((padded_rows, _LANES), slab_dtype),
        grid=grid,
        in_specs=[
            pl.BlockSpec(memory_space=pltpu.MemorySpace.SMEM),  # (a, b) scalars
            tile_spec,                                          # fused start slab
            tile_spec,                                          # fused stop slab
        ],
        out_specs=tile_spec,
        compiler_params=pltpu.CompilerParams(
            dimension_semantics=("parallel",)
        ),
    )(ab, s2, e2)

    # --- Split the fused output back into per-parameter tensors. ---
    flat_out = out.reshape(-1)
    results = []
    offset = 0
    for sz, shp in zip(sizes, out_shapes):
        results.append(flat_out[offset:offset + sz].reshape(shp))
        offset += sz
    return results


def mix_line_fourier_reference(t, cos_coef, sin_coef, frequency, starts, stops):
    """Pure-JAX reference matching the PyTorch forward exactly."""
    t = jnp.asarray(t, jnp.float32)
    cos_bias = jnp.cos(frequency * t)
    sin_bias = jnp.sin(frequency * t)
    start_coef = jnp.sum(cos_coef * cos_bias, axis=1) + (1.0 - t)  # shape (1,)
    stop_coef = jnp.sum(sin_coef * sin_bias, axis=1) + t           # shape (1,)
    out = []
    for p1, p2 in zip(starts, stops):
        out.append(p1 * start_coef + p2 * stop_coef)
    return out


def make_frequency(order):
    # torch.mm(2*pi / (4*[[1]]), [[4n+1 ...]]) -> (1, order)
    displacement = jnp.array([[1.0]], dtype=jnp.float32)
    times = jnp.array([[4.0 * n + 1.0 for n in range(order)]], dtype=jnp.float32)
    return (2.0 * math.pi / (4.0 * displacement)) @ times


if __name__ == "__main__":
    key = jax.random.PRNGKey(0)
    k1, k2, k3, k4, k5, k6 = jax.random.split(key, 6)

    order = 5
    frequency = make_frequency(order)  # (1, 5)

    # Module parameters (shape (1, order)); initialized to zeros in the module,
    # use small deterministic nonzero values to exercise the Fourier path.
    cos_coef = 0.1 * jax.random.normal(k1, (1, order), dtype=jnp.float32)
    sin_coef = 0.1 * jax.random.normal(k2, (1, order), dtype=jnp.float32)

    # Endpoint parameter tensors (start / stop): a conv-like weight and a dense
    # weight whose size is NOT a multiple of 128 (exercises padding path).
    starts = [
        jax.random.normal(k3, (2, 4, 16, 16), dtype=jnp.float32),
        jax.random.normal(k4, (32, 8), dtype=jnp.float32),
    ]
    stops = [
        jax.random.normal(k5, (2, 4, 16, 16), dtype=jnp.float32),
        jax.random.normal(k6, (32, 8), dtype=jnp.float32),
    ]

    t = 0.3

    outs = mix_line_fourier_forward(t, cos_coef, sin_coef, frequency, starts, stops)
    outs = [jax.block_until_ready(o) for o in outs]

    refs = mix_line_fourier_reference(t, cos_coef, sin_coef, frequency, starts, stops)
    for o, r in zip(outs, refs):
        assert o.shape == r.shape, (o.shape, r.shape)
        assert jnp.allclose(o, r, atol=1e-5, rtol=1e-5), float(jnp.max(jnp.abs(o - r)))

    print("KERNEL_OK")
</pallas_src>

<mosaic_0001>
module attributes {stable_mosaic.version = 11 : i64} {
  func.func @_mix_kernel(%arg0: i32, %arg1: memref<2xf32, #tpu.memory_space<smem>>, %arg2: memref<24x128xf32, #tpu.memory_space<vmem>>, %arg3: memref<24x128xf32, #tpu.memory_space<vmem>>, %arg4: memref<24x128xf32, #tpu.memory_space<vmem>>) attributes {dimension_semantics = [#tpu.dimension_semantics<parallel>], iteration_bounds = array<i64: 1>, scalar_prefetch = 0 : i64, scratch_operands = 0 : i64, tpu.core_type = #tpu.core_type<tc>, window_params = [{transform_indices = @transform_0, window_bounds = array<i64: 2>}, {transform_indices = @transform_1, window_bounds = array<i64: 24, 128>}, {transform_indices = @transform_2, window_bounds = array<i64: 24, 128>}, {transform_indices = @transform_3, window_bounds = array<i64: 24, 128>}]} {
    %c0 = arith.constant 0 : index
    %0 = memref.load %arg1[%c0] : memref<2xf32, #tpu.memory_space<smem>>
    %c1 = arith.constant 1 : index
    %1 = memref.load %arg1[%c1] : memref<2xf32, #tpu.memory_space<smem>>
    %c0_0 = arith.constant 0 : index
    %c0_1 = arith.constant 0 : index
    %2 = vector.load %arg2[%c0_0, %c0_1] : memref<24x128xf32, #tpu.memory_space<vmem>>, vector<24x128xf32>
    %3 = vector.broadcast %0 : f32 to vector<24x128xf32>
    %4 = arith.mulf %2, %3 : vector<24x128xf32>
    %c0_2 = arith.constant 0 : index
    %c0_3 = arith.constant 0 : index
    %5 = vector.load %arg3[%c0_2, %c0_3] : memref<24x128xf32, #tpu.memory_space<vmem>>, vector<24x128xf32>
    %6 = vector.broadcast %1 : f32 to vector<24x128xf32>
    %7 = arith.mulf %5, %6 : vector<24x128xf32>
    %8 = arith.addf %4, %7 : vector<24x128xf32>
    %c0_4 = arith.constant 0 : index
    %c0_5 = arith.constant 0 : index
    %9 = vector.load %arg4[%c0_4, %c0_5] : memref<24x128xf32, #tpu.memory_space<vmem>>, vector<24x128xf32>
    tpu.vector_store %arg4[%c0_4, %c0_5], %8 {strides = array<i32>} : memref<24x128xf32, #tpu.memory_space<vmem>>, vector<24x128xf32>,
    return
  }
  func.func @transform_0(%arg0: i32) -> i32 {
    %c0_i32 = arith.constant 0 : i32
    %c0_i32_0 = arith.constant 0 : i32
    return %c0_i32 : i32
  }
  func.func @transform_1(%arg0: i32) -> (i32, i32) {
    %c0_i32 = arith.constant 0 : i32
    %c0_i32_0 = arith.constant 0 : i32
    return %arg0, %c0_i32 : i32, i32
  }
  func.func @transform_2(%arg0: i32) -> (i32, i32) {
    %c0_i32 = arith.constant 0 : i32
    %c0_i32_0 = arith.constant 0 : i32
    return %arg0, %c0_i32 : i32, i32
  }
  func.func @transform_3(%arg0: i32) -> (i32, i32) {
    %c0_i32 = arith.constant 0 : i32
    %c0_i32_0 = arith.constant 0 : i32
    return %arg0, %c0_i32 : i32, i32
  }
}

</mosaic_0001>

<bundles_post_ra>
// kernel: tpu_custom_call.1
= control target key start
LH: loop header
LB: loop body
LE: loop exit
PB: predicated region body
PF: predicated region fallthrough
CT: control target
= control target key end

     0   :  { %8 = vsyncpa [#allocation5], 0  ;;  %s269_s0 = inlined_call_operand.hbm [shape: f32[2], index: 0, kind: input, shape index: {}]   ;;  %s270_s1 = inlined_call_operand.hbm [shape: f32[24,128], index: 1, kind: input, shape index: {}]   ;;  %s271_s2 = inlined_call_operand.hbm [shape: f32[24,128], index: 2, kind: input, shape index: {}]   ;;  %s272_s3 = inlined_call_operand.hbm [shape: f32[24,128], index: 3, kind: output, shape index: {}]  }
   0x1   :  { %9 = vsyncpa [#allocation3], 0 }
   0x2   :  { %10 = vsyncpa [#allocation8], 0 }
   0x3   :  { %11 = vsyncpa [#allocation4], 0  ;;  %s102_s14 = scalar_lea.hbm %s269_s0, 16 }
   0x4   :  { %p103_p0 = scmp.ne.s32.totalorder %s269_s0, %s102_s14  ;;  %p106_p1 = scmp.lt.u32.totalorder %s102_s14, %s269_s0 }
   0x6   :  { %p108_p2 = pnand %p106_p1, %p103_p0 }
   0x8   :  { %111 = shalt.err (!%p108_p2)
}
   0x9   :  { %s186_s19 = smov [#allocation2]   ;;  %s187_s22 = smov [#allocation6]  }
   0xa   :  { %19 = dma.hbm_to_smem %s269_s0, 16, %s186_s19, [#allocation5]  }
   0xb   :  { %s25_s23 = sshll.u32 %s187_s22, 4  ;;  %s112_s26 = scalar_lea.hbm %s270_s1, 384  ;;  %s26_s23 = int_to_ptr.vmem [resolvable:$true] %s25_s23 }
   0xc   :  { %p113_p3 = scmp.ne.s32.totalorder %s270_s1, %s112_s26  ;;  %p116_p4 = scmp.lt.u32.totalorder %s112_s26, %s270_s1 }
   0xe   :  { %p118_p5 = pnand %p116_p4, %p113_p3 }
  0x10   :  { %121 = shalt.err (!%p118_p5)
}
  0x11   :  { %s122_s4 = scalar_lea.vmem %s26_s23, 384  ;;  %p127_p7 = scmp.lt.s32.totalorder %s26_s23, %s26_s23 }
  0x12   :  { %p123_p6 = scmp.ne.s32.totalorder %s26_s23, %s122_s4  ;;  %p128_p8 = scmp.lt.s32.totalorder %s122_s4, %s122_s4 }
  0x14   :  { %p129_p9 = por %p128_p8, %p127_p7 }
  0x16   :  { %p130_p10 = pnand %p129_p9, %p123_p6 }
  0x18   :  { %133 = shalt.err (!%p130_p10)
}
  0x19   :  { %s188_s0 = smov 128   ;;  %s189_s5 = smov 8  }
  0x1a   :  { %31 = dma.hbm_to_vmem [thread:$0]  %s270_s1, 384, %s26_s23, [#allocation3], %s188_s0, %s188_s0, %s189_s5  }
  0x1b   :  { %s190_s8 = smov [#allocation7]   ;;  %s134_s12 = scalar_lea.hbm %s271_s2, 384 }
  0x1c   :  { %s37_s9 = sshll.u32 %s190_s8, 4  ;;  %p135_p11 = scmp.ne.s32.totalorder %s271_s2, %s134_s12  ;;  %s38_s9 = int_to_ptr.vmem [resolvable:$true] %s37_s9 }
  0x1d   :  { %p138_p12 = scmp.lt.u32.totalorder %s134_s12, %s271_s2 }
  0x1f   :  { %p140_p13 = pnand %p138_p12, %p135_p11 }
  0x21   :  { %143 = shalt.err (!%p140_p13)
}
  0x22   :  { %s144_s17 = scalar_lea.vmem %s38_s9, 384  ;;  %p149_p1 = scmp.lt.s32.totalorder %s38_s9, %s38_s9 }
  0x23   :  { %p145_p0 = scmp.ne.s32.totalorder %s38_s9, %s144_s17  ;;  %p150_p2 = scmp.lt.s32.totalorder %s144_s17, %s144_s17 }
  0x25   :  { %p151_p3 = por %p150_p2, %p149_p1 }
  0x27   :  { %p152_p4 = pnand %p151_p3, %p145_p0 }
  0x29   :  { %155 = shalt.err (!%p152_p4)
}
  0x2a   :  { %43 = dma.hbm_to_vmem [thread:$0]  %s271_s2, 384, %s38_s9, [#allocation8], %s188_s0, %s188_s0, %s189_s5  }
  0x2b   :  { %178 = dma.done.wait [#allocation5], 16  }
  0x2c   :  { %179 = vsyncadd [#allocation5], 4294967280 }
  0x2d   :  { %180 = dma.done.wait [#allocation3], 384  }
  0x2e   :  { %181 = vsyncadd [#allocation3], 4294966912 }
  0x2f   :  { %182 = dma.done.wait [#allocation8], 384  }
  0x30   :  { %183 = vsyncadd [#allocation8], 4294966912 }
  0x31   :  { %53 = sfence }
  0x32   :  { %s54_s19 = sld [smem:[#allocation2]]  ;;  %s95_s20 = sld [smem:[#allocation2 + $0x1]]  ;;  %v56_v0 = vld [vmem:[#allocation6] sm:$0xff]  ;;  %v63_v1 = vld [vmem:[#allocation7] sm:$0xff]  ;;  %v57_v2 = vld [vmem:[#allocation6 + $0x8] sm:$0xff] }
  0x33   :  { %v64_v3 = vld [vmem:[#allocation7 + $0x8] sm:$0xff]  ;;  %v58_v4 = vld [vmem:[#allocation6 + $0x10] sm:$0xff]  ;;  %v65_v5 = vld [vmem:[#allocation7 + $0x10] sm:$0xff]  ;;  %s191_s2 = smov [#allocation9]  }
  0x34   :  { %s81_s21 = sshll.u32 %s191_s2, 4  ;;  %s82_s21 = int_to_ptr.vmem [resolvable:$true] %s81_s21 }
  0x35   :  { %s156_s22 = scalar_lea.vmem %s82_s21, 384  ;;  %p161_p6 = scmp.lt.s32.totalorder %s82_s21, %s82_s21 }
  0x36   :  { %p157_p5 = scmp.ne.s32.totalorder %s82_s21, %s156_s22  ;;  %p162_p7 = scmp.lt.s32.totalorder %s156_s22, %s156_s22 }
  0x38   :  { %v59_v6 = vstv %s54_s19  ;;  %v66_v7 = vstv %s95_s20  ;;  %p163_p8 = por %p162_p7, %p161_p6 }
  0x39   :  { %v60_v8 = vmul.f32 %v59_v6, %v56_v0  ;;  %v67_v9 = vmul.f32 %v66_v7, %v63_v1  ;;  %v61_v10 = vmul.f32 %v59_v6, %v57_v2  ;;  %v68_v11 = vmul.f32 %v66_v7, %v64_v3 }
  0x3a   :  { %v62_v12 = vmul.f32 %v59_v6, %v58_v4  ;;  %v69_v13 = vmul.f32 %v66_v7, %v65_v5  ;;  %p164_p9 = pnand %p163_p8, %p157_p5 }
  0x3b   :  { %v70_v14 = vadd.f32 %v67_v9, %v60_v8  ;;  %v71_v15 = vadd.f32 %v68_v11, %v61_v10 }
  0x3c   :  { %v72_v16 = vadd.f32 %v69_v13, %v62_v12 }
  0x3d   :  { %73 = vst [vmem:[#allocation9] sm:$0xff] %v70_v14  ;;  %74 = vst [vmem:[#allocation9 + $0x8] sm:$0xff] %v71_v15 }
  0x3e   :  { %75 = vst [vmem:[#allocation9 + $0x10] sm:$0xff] %v72_v16 }
  0x3f   :  { %167 = shalt.err (!%p164_p9)
}
  0x40   :  { %s168_s25 = scalar_lea.hbm %s272_s3, 384 }
  0x41   :  { %p169_p10 = scmp.ne.s32.totalorder %s272_s3, %s168_s25  ;;  %p172_p11 = scmp.lt.u32.totalorder %s168_s25, %s272_s3 }
  0x43   :  { %p174_p12 = pnand %p172_p11, %p169_p10 }
  0x45   :  { %177 = shalt.err (!%p174_p12)
}
  0x46   :  { %87 = dma.vmem_to_hbm [thread:$0]  %s82_s21, 384, %s272_s3, [#allocation4], %s188_s0, %s188_s0, %s189_s5  }
  0x47   :  { %184 = dma.done.wait [#allocation4], 384  }
  0x48   :  { %185 = vsyncadd [#allocation4], 4294966912 }
  0x49   :  { %91 = vsyncpa [#allocation3], 1 }
  0x4a   :  { %92 = vsyncpa [#allocation8], 1 }
  0x4b   :  { %93 = vsyncpa [#allocation4], 1 }
  0x4c   :  { %94 = vsyncpa [#allocation5], 1 }

</bundles_post_ra>
